<compile_context>
chip_gen: v7x
topology: tpu7x:2x2x1
jax: 0.10.0
libtpu: 0.0.40
codegen_flags: <defaults>
</compile_context>

<pallas_src>
import jax
import jax.numpy as jnp
from jax import lax
from jax.experimental import pallas as pl
from jax.experimental.pallas import tpu as pltpu


def _self_attention_kernel(x_ref, wq_ref, bq_ref, wk_ref, bk_ref,
                           wv_ref, bv_ref, wo_ref, bo_ref,
                           o_ref, k_scr, v_scr):
    # x_ref : (1, N, D) bf16   full token block for the current batch element
    # w*_ref: bf16 weights, (in, out) layout ; b*_ref: f32 biases, (1, out)
    # o_ref : (1, TQ, D) bf16  one query tile of the output
    # k_scr : (N, DRP) bf16 ;  v_scr : (N, D) bf16   per-batch K/V cache
    qi = pl.program_id(1)
    x = x_ref[0]                                                   # (N, D) bf16

    # K/V projections once per batch element; the query-tile axis iterates
    # innermost ("arbitrary"), so the scratch stays valid for all its tiles.
    @pl.when(qi == 0)
    def _():
        k = jnp.dot(x, wk_ref[...], preferred_element_type=jnp.float32) + bk_ref[...]
        v = jnp.dot(x, wv_ref[...], preferred_element_type=jnp.float32) + bv_ref[...]
        k_scr[...] = k.astype(k_scr.dtype)
        v_scr[...] = v.astype(v_scr.dtype)

    tq = o_ref.shape[1]
    row0 = pl.multiple_of(qi * tq, tq)
    xq = x_ref[0, pl.ds(row0, tq), :]                              # (TQ, D) bf16

    # Q projection for this query tile (padded Dr columns are exact zeros).
    q = jnp.dot(xq, wq_ref[...], preferred_element_type=jnp.float32) + bq_ref[...]

    # energy[n, m] = q[n] . k[m] -- contract the padded-Dr axis, no transpose copy.
    energy = lax.dot_general(q.astype(jnp.bfloat16), k_scr[...],
                             (((1,), (1,)), ((), ())),
                             preferred_element_type=jnp.float32)   # (TQ, N) f32

    # Numerically stable softmax with deferred normalization (f32 VPU/EUP math).
    m = jnp.max(energy, axis=-1, keepdims=True)
    p = jnp.exp(energy - m)
    l = jnp.sum(p, axis=-1, keepdims=True)

    out = jnp.dot(p.astype(jnp.bfloat16), v_scr[...],
                  preferred_element_type=jnp.float32)              # (TQ, D) f32
    out = out * pl.reciprocal(l, approx=True)

    # Output projection + residual; D sits on the lane axis for every store.
    y = jnp.dot(out.astype(jnp.bfloat16), wo_ref[...],
                preferred_element_type=jnp.float32) + bo_ref[...]
    o_ref[0] = (y + xq.astype(jnp.float32)).astype(o_ref.dtype)


def _pick_query_tile(n):
    """Largest query tile <= 512 that divides N (and is sublane-friendly)."""
    if n <= 512:
        return n
    for tq in (512, 256, 128, 64, 32, 16, 8):
        if n % tq == 0:
            return tq
    return n


def self_attention_forward(x_nchw, params):
    """Fused Pallas self-attention forward.  Input is NCHW with W == in_dim.

    Output is bf16 (deliberate: bf16 x/out halve HBM traffic and feed the
    bf16-native MXU; all matmuls still accumulate in f32).
    """
    B, C, H, W = x_nchw.shape
    D = W
    Dr = params["wq"].shape[1]
    assert params["wq"].shape[0] == D, "nn.Linear acts on the width dim: W must equal in_dim"
    N = C * H

    # Tokens on the sublane axis, features (D) on the lane axis; pure reshape.
    x = x_nchw.reshape(B, N, D).astype(jnp.bfloat16)

    # Zero-pad the reduced Q/K width up to a multiple of 128 so Q/K are lane-dense
    # and the QK^T contraction runs at full MXU depth (bit-exact: padded columns are
    # identically zero).  In production this prep would be hoisted / done once.
    DRP = ((Dr + 127) // 128) * 128
    wq = jnp.pad(params["wq"], ((0, 0), (0, DRP - Dr))).astype(jnp.bfloat16)
    wk = jnp.pad(params["wk"], ((0, 0), (0, DRP - Dr))).astype(jnp.bfloat16)
    bq = jnp.pad(params["bq"], ((0, 0), (0, DRP - Dr))).astype(jnp.float32)
    bk = jnp.pad(params["bk"], ((0, 0), (0, DRP - Dr))).astype(jnp.float32)
    wv = params["wv"].astype(jnp.bfloat16)
    wo = params["wo"].astype(jnp.bfloat16)
    bv = params["bv"].astype(jnp.float32)
    bo = params["bo"].astype(jnp.float32)

    TQ = _pick_query_tile(N)
    n_qt = N // TQ
    grid = (B, n_qt)

    flops = int(2 * B * (2 * N * D * DRP + 2 * N * D * D + N * N * DRP + N * N * D))
    bytes_accessed = int(2 * (2 * B * N * D + 2 * D * DRP + 2 * D * D)
                         + 4 * (2 * DRP + 2 * D))
    cost = pl.CostEstimate(flops=flops, transcendentals=int(B * N * N),
                           bytes_accessed=bytes_accessed)

    out = pl.pallas_call(
        _self_attention_kernel,
        out_shape=jax.ShapeDtypeStruct((B, N, D), jnp.bfloat16),
        grid_spec=pltpu.PrefetchScalarGridSpec(
            num_scalar_prefetch=0,
            grid=grid,
            in_specs=[
                pl.BlockSpec((1, N, D), lambda b, q: (b, 0, 0)),   # x (per-batch block)
                pl.BlockSpec((D, DRP), lambda b, q: (0, 0)),       # wq (resident)
                pl.BlockSpec((1, DRP), lambda b, q: (0, 0)),       # bq
                pl.BlockSpec((D, DRP), lambda b, q: (0, 0)),       # wk
                pl.BlockSpec((1, DRP), lambda b, q: (0, 0)),       # bk
                pl.BlockSpec((D, D), lambda b, q: (0, 0)),         # wv
                pl.BlockSpec((1, D), lambda b, q: (0, 0)),         # bv
                pl.BlockSpec((D, D), lambda b, q: (0, 0)),         # wo
                pl.BlockSpec((1, D), lambda b, q: (0, 0)),         # bo
            ],
            out_specs=pl.BlockSpec((1, TQ, D), lambda b, q: (b, q, 0)),
            scratch_shapes=[
                pltpu.VMEM((N, DRP), jnp.bfloat16),                # K cache
                pltpu.VMEM((N, D), jnp.bfloat16),                  # V cache
            ],
        ),
        compiler_params=pltpu.CompilerParams(
            dimension_semantics=("parallel", "arbitrary"),
            vmem_limit_bytes=48 * 1024 * 1024,   # headroom under v7x's 64 MiB VMEM
        ),
        cost_estimate=cost,
        # Alias x <-> out when each x block coincides with its output block (the x
        # block is fully VMEM-resident before its output block is written back).
        input_output_aliases={0: 0} if n_qt == 1 else {},
    )(x, wq, bq, wk, bk, wv, bv, wo, bo)

    return out.reshape(B, C, H, W)


def init_params(key, in_dim, reduction_ratio=8):
    """Deterministic synthetic nn.Linear-style parameters, (in, out) layout, f32."""
    assert in_dim % reduction_ratio == 0
    dr = in_dim // reduction_ratio
    ks = jax.random.split(key, 8)

    def linear(kw, kb, fan_in, fan_out):
        bound = fan_in ** -0.5
        w = jax.random.uniform(kw, (fan_in, fan_out), jnp.float32, -bound, bound)
        b = jax.random.uniform(kb, (1, fan_out), jnp.float32, -bound, bound)
        return w, b

    wq, bq = linear(ks[0], ks[1], in_dim, dr)
    wk, bk = linear(ks[2], ks[3], in_dim, dr)
    wv, bv = linear(ks[4], ks[5], in_dim, in_dim)
    wo, bo = linear(ks[6], ks[7], in_dim, in_dim)
    return dict(wq=wq, bq=bq, wk=wk, bk=bk, wv=wv, bv=bv, wo=wo, bo=bo)


def self_attention_reference(x_nchw, p):
    """Pure-JAX f32 HIGHEST-precision reference (same params), for checking."""
    B, C, H, W = x_nchw.shape
    D, N = W, C * H
    x = x_nchw.reshape(B, N, D).astype(jnp.float32)
    hp = lax.Precision.HIGHEST
    q = jnp.einsum('bnd,de->bne', x, p["wq"], precision=hp) + p["bq"]
    k = jnp.einsum('bnd,de->bne', x, p["wk"], precision=hp) + p["bk"]
    v = jnp.einsum('bnd,de->bne', x, p["wv"], precision=hp) + p["bv"]
    energy = jnp.einsum('bne,bme->bnm', q, k, precision=hp)
    attn = jax.nn.softmax(energy, axis=-1)
    out = jnp.einsum('bnm,bmd->bnd', attn, v, precision=hp)
    y = jnp.einsum('bnd,de->bne', out, p["wo"], precision=hp) + p["bo"]
    return (y + x).reshape(B, C, H, W)


if __name__ == "__main__":
    # Small shapes consistent with the module: nn.Linear acts on the width dim,
    # so W == in_dim.  Tokens are the C*H positions.
    B, C, H = 2, 4, 16
    in_dim, reduction_ratio = 32, 8
    W = in_dim

    key = jax.random.PRNGKey(0)
    kx, kparams = jax.random.split(key)
    x = jax.random.normal(kx, (B, C, H, W), jnp.float32)
    params = init_params(kparams, in_dim, reduction_ratio)

    out = self_attention_forward(x, params)
    out = jax.block_until_ready(out)
    assert out.shape == (B, C, H, W), out.shape

    ref = self_attention_reference(x, params)
    out_f32 = out.astype(jnp.float32)
    max_err = float(jnp.max(jnp.abs(out_f32 - ref)))
    # bf16 MXU operands and bf16 x/out storage are a deliberate perf choice, so the
    # comparison against the f32 Precision.HIGHEST reference uses a bf16-appropriate
    # tolerance.
    assert jnp.allclose(out_f32, ref, atol=3e-2, rtol=3e-2), max_err
    print("KERNEL_OK")
</pallas_src>

<mosaic_0001>
module attributes {stable_mosaic.version = 11 : i64} {
  func.func @_self_attention_kernel(%arg0: i32, %arg1: i32, %arg2: memref<1x64x32xbf16, #tpu.memory_space<vmem>>, %arg3: memref<32x128xbf16, #tpu.memory_space<vmem>>, %arg4: memref<1x128xf32, #tpu.memory_space<vmem>>, %arg5: memref<32x128xbf16, #tpu.memory_space<vmem>>, %arg6: memref<1x128xf32, #tpu.memory_space<vmem>>, %arg7: memref<32x32xbf16, #tpu.memory_space<vmem>>, %arg8: memref<1x32xf32, #tpu.memory_space<vmem>>, %arg9: memref<32x32xbf16, #tpu.memory_space<vmem>>, %arg10: memref<1x32xf32, #tpu.memory_space<vmem>>, %arg11: memref<1x64x32xbf16, #tpu.memory_space<vmem>>, %arg12: memref<64x128xbf16, #tpu.memory_space<vmem>>, %arg13: memref<64x32xbf16, #tpu.memory_space<vmem>>) attributes {dimension_semantics = [#tpu.dimension_semantics<parallel>, #tpu.dimension_semantics<arbitrary>], iteration_bounds = array<i64: 2, 1>, scalar_prefetch = 0 : i64, scratch_operands = 2 : i64, tpu.core_type = #tpu.core_type<tc>, window_params = [{transform_indices = @transform_0, window_bounds = array<i64: 1, 64, 32>}, {pipeline_mode = #tpu.pipeline_mode<synchronous>, transform_indices = @transform_1, window_bounds = array<i64: 32, 128>}, {pipeline_mode = #tpu.pipeline_mode<synchronous>, transform_indices = @transform_2, window_bounds = array<i64: 1, 128>}, {pipeline_mode = #tpu.pipeline_mode<synchronous>, transform_indices = @transform_3, window_bounds = array<i64: 32, 128>}, {pipeline_mode = #tpu.pipeline_mode<synchronous>, transform_indices = @transform_4, window_bounds = array<i64: 1, 128>}, {pipeline_mode = #tpu.pipeline_mode<synchronous>, transform_indices = @transform_5, window_bounds = array<i64: 32, 32>}, {pipeline_mode = #tpu.pipeline_mode<synchronous>, transform_indices = @transform_6, window_bounds = array<i64: 1, 32>}, {pipeline_mode = #tpu.pipeline_mode<synchronous>, transform_indices = @transform_7, window_bounds = array<i64: 32, 32>}, {pipeline_mode = #tpu.pipeline_mode<synchronous>, transform_indices = @transform_8, window_bounds = array<i64: 1, 32>}, {transform_indices = @transform_9, window_bounds = array<i64: 1, 64, 32>}]} {
    %c0 = arith.constant 0 : index
    %c0_0 = arith.constant 0 : index
    %c0_1 = arith.constant 0 : index
    %0 = vector.load %arg2[%c0, %c0_0, %c0_1] : memref<1x64x32xbf16, #tpu.memory_space<vmem>>, vector<1x64x32xbf16>
    %1 = vector.shape_cast %0 : vector<1x64x32xbf16> to vector<64x32xbf16>
    %c0_i32 = arith.constant 0 : i32
    %2 = arith.cmpi eq, %arg1, %c0_i32 : i32
    %3 = arith.extui %2 : i1 to i32
    %c0_i32_2 = arith.constant 0 : i32
    %4 = arith.cmpi ne, %3, %c0_i32_2 : i32
    scf.if %4 {
      %c0_25 = arith.constant 0 : index
      %c0_26 = arith.constant 0 : index
      %43 = vector.load %arg5[%c0_25, %c0_26] : memref<32x128xbf16, #tpu.memory_space<vmem>>, vector<32x128xbf16>
      %cst_27 = arith.constant dense<0.000000e+00> : vector<64x128xf32>
      %44 = tpu.matmul %1, %43, %cst_27 {dimension_numbers = #tpu.dot_dimension_numbers<[1], [0], [0], [1], [0, 0, 1, 1], [], []>} : vector<64x32xbf16>, vector<32x128xbf16>, vector<64x128xf32> -> vector<64x128xf32>
      %c0_28 = arith.constant 0 : index
      %c0_29 = arith.constant 0 : index
      %45 = vector.load %arg6[%c0_28, %c0_29] : memref<1x128xf32, #tpu.memory_space<vmem>>, vector<1x128xf32>
      %46 = vector.broadcast %45 : vector<1x128xf32> to vector<64x128xf32>
      %47 = arith.addf %44, %46 : vector<64x128xf32>
      %c0_30 = arith.constant 0 : index
      %c0_31 = arith.constant 0 : index
      %48 = vector.load %arg7[%c0_30, %c0_31] : memref<32x32xbf16, #tpu.memory_space<vmem>>, vector<32x32xbf16>
      %cst_32 = arith.constant dense<0.000000e+00> : vector<64x32xf32>
      %49 = tpu.matmul %1, %48, %cst_32 {dimension_numbers = #tpu.dot_dimension_numbers<[1], [0], [0], [1], [0, 0, 1, 1], [], []>} : vector<64x32xbf16>, vector<32x32xbf16>, vector<64x32xf32> -> vector<64x32xf32>
      %c0_33 = arith.constant 0 : index
      %c0_34 = arith.constant 0 : index
      %50 = vector.load %arg8[%c0_33, %c0_34] : memref<1x32xf32, #tpu.memory_space<vmem>>, vector<1x32xf32>
      %51 = vector.broadcast %50 : vector<1x32xf32> to vector<64x32xf32>
      %52 = arith.addf %49, %51 : vector<64x32xf32>
      %53 = arith.truncf %47 : vector<64x128xf32> to vector<64x128xbf16>
      %c0_35 = arith.constant 0 : index
      %c0_36 = arith.constant 0 : index
      %54 = vector.load %arg12[%c0_35, %c0_36] : memref<64x128xbf16, #tpu.memory_space<vmem>>, vector<64x128xbf16>
      tpu.vector_store %arg12[%c0_35, %c0_36], %53 {strides = array<i32>} : memref<64x128xbf16, #tpu.memory_space<vmem>>, vector<64x128xbf16>,
      %55 = arith.truncf %52 : vector<64x32xf32> to vector<64x32xbf16>
      %c0_37 = arith.constant 0 : index
      %c0_38 = arith.constant 0 : index
      %56 = vector.load %arg13[%c0_37, %c0_38] : memref<64x32xbf16, #tpu.memory_space<vmem>>, vector<64x32xbf16>
      tpu.vector_store %arg13[%c0_37, %c0_38], %55 {strides = array<i32>} : memref<64x32xbf16, #tpu.memory_space<vmem>>, vector<64x32xbf16>,
    } else {
    }
    %c64_i32 = arith.constant 64 : i32
    %5 = arith.muli %arg1, %c64_i32 : i32
    %6 = tpu.assume_multiple %5, 64 : i32
    %c0_3 = arith.constant 0 : index
    %7 = arith.index_cast %6 : i32 to index
    %c0_4 = arith.constant 0 : index
    %8 = vector.load %arg2[%c0_3, %7, %c0_4] : memref<1x64x32xbf16, #tpu.memory_space<vmem>>, vector<1x64x32xbf16>
    %9 = vector.shape_cast %8 : vector<1x64x32xbf16> to vector<64x32xbf16>
    %c0_5 = arith.constant 0 : index
    %c0_6 = arith.constant 0 : index
    %10 = vector.load %arg3[%c0_5, %c0_6] : memref<32x128xbf16, #tpu.memory_space<vmem>>, vector<32x128xbf16>
    %cst = arith.constant dense<0.000000e+00> : vector<64x128xf32>
    %11 = tpu.matmul %9, %10, %cst {dimension_numbers = #tpu.dot_dimension_numbers<[1], [0], [0], [1], [0, 0, 1, 1], [], []>} : vector<64x32xbf16>, vector<32x128xbf16>, vector<64x128xf32> -> vector<64x128xf32>
    %c0_7 = arith.constant 0 : index
    %c0_8 = arith.constant 0 : index
    %12 = vector.load %arg4[%c0_7, %c0_8] : memref<1x128xf32, #tpu.memory_space<vmem>>, vector<1x128xf32>
    %13 = vector.broadcast %12 : vector<1x128xf32> to vector<64x128xf32>
    %14 = arith.addf %11, %13 : vector<64x128xf32>
    %15 = arith.truncf %14 : vector<64x128xf32> to vector<64x128xbf16>
    %c0_9 = arith.constant 0 : index
    %c0_10 = arith.constant 0 : index
    %16 = vector.load %arg12[%c0_9, %c0_10] : memref<64x128xbf16, #tpu.memory_space<vmem>>, vector<64x128xbf16>
    %cst_11 = arith.constant dense<0.000000e+00> : vector<64x64xf32>
    %17 = tpu.matmul %15, %16, %cst_11 {dimension_numbers = #tpu.dot_dimension_numbers<[1], [1], [0], [0], [0, 0, 1, 0], [], []>} : vector<64x128xbf16>, vector<64x128xbf16>, vector<64x64xf32> -> vector<64x64xf32>
    %cst_12 = arith.constant dense<0xFF800000> : vector<64xf32>
    %18 = vector.multi_reduction <maximumf>, %17, %cst_12 [1] : vector<64x64xf32> to vector<64xf32>
    %19 = vector.shape_cast %18 : vector<64xf32> to vector<64x1xf32>
    %20 = vector.broadcast %19 : vector<64x1xf32> to vector<64x64xf32>
    %21 = arith.subf %17, %20 : vector<64x64xf32>
    %22 = math.exp %21 : vector<64x64xf32>
    %cst_13 = arith.constant dense<0.000000e+00> : vector<64xf32>
    %23 = vector.multi_reduction <add>, %22, %cst_13 [1] : vector<64x64xf32> to vector<64xf32>
    %24 = vector.shape_cast %23 : vector<64xf32> to vector<64x1xf32>
    %25 = arith.truncf %22 : vector<64x64xf32> to vector<64x64xbf16>
    %c0_14 = arith.constant 0 : index
    %c0_15 = arith.constant 0 : index
    %26 = vector.load %arg13[%c0_14, %c0_15] : memref<64x32xbf16, #tpu.memory_space<vmem>>, vector<64x32xbf16>
    %cst_16 = arith.constant dense<0.000000e+00> : vector<64x32xf32>
    %27 = tpu.matmul %25, %26, %cst_16 {dimension_numbers = #tpu.dot_dimension_numbers<[1], [0], [0], [1], [0, 0, 1, 1], [], []>} : vector<64x64xbf16>, vector<64x32xbf16>, vector<64x32xf32> -> vector<64x32xf32>
    %28 = tpu.reciprocal %24 {approx = true} : vector<64x1xf32> -> vector<64x1xf32>
    %29 = vector.broadcast %28 : vector<64x1xf32> to vector<64x32xf32>
    %30 = arith.mulf %27, %29 : vector<64x32xf32>
    %31 = arith.truncf %30 : vector<64x32xf32> to vector<64x32xbf16>
    %c0_17 = arith.constant 0 : index
    %c0_18 = arith.constant 0 : index
    %32 = vector.load %arg9[%c0_17, %c0_18] : memref<32x32xbf16, #tpu.memory_space<vmem>>, vector<32x32xbf16>
    %cst_19 = arith.constant dense<0.000000e+00> : vector<64x32xf32>
    %33 = tpu.matmul %31, %32, %cst_19 {dimension_numbers = #tpu.dot_dimension_numbers<[1], [0], [0], [1], [0, 0, 1, 1], [], []>} : vector<64x32xbf16>, vector<32x32xbf16>, vector<64x32xf32> -> vector<64x32xf32>
    %c0_20 = arith.constant 0 : index
    %c0_21 = arith.constant 0 : index
    %34 = vector.load %arg10[%c0_20, %c0_21] : memref<1x32xf32, #tpu.memory_space<vmem>>, vector<1x32xf32>
    %35 = vector.broadcast %34 : vector<1x32xf32> to vector<64x32xf32>
    %36 = arith.addf %33, %35 : vector<64x32xf32>
    %37 = arith.extf %9 : vector<64x32xbf16> to vector<64x32xf32>
    %38 = arith.addf %36, %37 : vector<64x32xf32>
    %39 = arith.truncf %38 : vector<64x32xf32> to vector<64x32xbf16>
    %c0_22 = arith.constant 0 : index
    %c0_23 = arith.constant 0 : index
    %c0_24 = arith.constant 0 : index
    %40 = vector.load %arg11[%c0_22, %c0_23, %c0_24] : memref<1x64x32xbf16, #tpu.memory_space<vmem>>, vector<1x64x32xbf16>
    %41 = vector.shape_cast %40 : vector<1x64x32xbf16> to vector<64x32xbf16>
    %42 = vector.shape_cast %39 : vector<64x32xbf16> to vector<1x64x32xbf16>
    tpu.vector_store %arg11[%c0_22, %c0_23, %c0_24], %42 {strides = array<i32>} : memref<1x64x32xbf16, #tpu.memory_space<vmem>>, vector<1x64x32xbf16>,
    return
  }
  func.func @transform_0(%arg0: i32, %arg1: i32) -> (i32, i32, i32) {
    %c0_i32 = arith.constant 0 : i32
    %c0_i32_0 = arith.constant 0 : i32
    %c0_i32_1 = arith.constant 0 : i32
    return %arg0, %c0_i32, %c0_i32_0 : i32, i32, i32
  }
  func.func @transform_1(%arg0: i32, %arg1: i32) -> (i32, i32) {
    %c0_i32 = arith.constant 0 : i32
    %c0_i32_0 = arith.constant 0 : i32
    %c0_i32_1 = arith.constant 0 : i32
    return %c0_i32, %c0_i32_0 : i32, i32
  }
  func.func @transform_2(%arg0: i32, %arg1: i32) -> (i32, i32) {
    %c0_i32 = arith.constant 0 : i32
    %c0_i32_0 = arith.constant 0 : i32
    %c0_i32_1 = arith.constant 0 : i32
    return %c0_i32, %c0_i32_0 : i32, i32
  }
  func.func @transform_3(%arg0: i32, %arg1: i32) -> (i32, i32) {
    %c0_i32 = arith.constant 0 : i32
    %c0_i32_0 = arith.constant 0 : i32
    %c0_i32_1 = arith.constant 0 : i32
    return %c0_i32, %c0_i32_0 : i32, i32
  }
  func.func @transform_4(%arg0: i32, %arg1: i32) -> (i32, i32) {
    %c0_i32 = arith.constant 0 : i32
    %c0_i32_0 = arith.constant 0 : i32
    %c0_i32_1 = arith.constant 0 : i32
    return %c0_i32, %c0_i32_0 : i32, i32
  }
  func.func @transform_5(%arg0: i32, %arg1: i32) -> (i32, i32) {
    %c0_i32 = arith.constant 0 : i32
    %c0_i32_0 = arith.constant 0 : i32
    %c0_i32_1 = arith.constant 0 : i32
    return %c0_i32, %c0_i32_0 : i32, i32
  }
  func.func @transform_6(%arg0: i32, %arg1: i32) -> (i32, i32) {
    %c0_i32 = arith.constant 0 : i32
    %c0_i32_0 = arith.constant 0 : i32
    %c0_i32_1 = arith.constant 0 : i32
    return %c0_i32, %c0_i32_0 : i32, i32
  }
  func.func @transform_7(%arg0: i32, %arg1: i32) -> (i32, i32) {
    %c0_i32 = arith.constant 0 : i32
    %c0_i32_0 = arith.constant 0 : i32
    %c0_i32_1 = arith.constant 0 : i32
    return %c0_i32, %c0_i32_0 : i32, i32
  }
  func.func @transform_8(%arg0: i32, %arg1: i32) -> (i32, i32) {
    %c0_i32 = arith.constant 0 : i32
    %c0_i32_0 = arith.constant 0 : i32
    %c0_i32_1 = arith.constant 0 : i32
    return %c0_i32, %c0_i32_0 : i32, i32
  }
  func.func @transform_9(%arg0: i32, %arg1: i32) -> (i32, i32, i32) {
    %c0_i32 = arith.constant 0 : i32
    %c0_i32_0 = arith.constant 0 : i32
    return %arg0, %arg1, %c0_i32 : i32, i32, i32
  }
}

</mosaic_0001>

<bundles_post_ra>
// kernel: tpu_custom_call.1
= control target key start
LH: loop header
LB: loop body
LE: loop exit
PB: predicated region body
PF: predicated region fallthrough
CT: control target
= control target key end

     0   :  { %s1562_s30 = smov 0   ;;  %s1564_s10 = smov 0   ;;  %s1716_s0 = inlined_call_operand.vmem [shape: bf16[2,64,32], index: 0, kind: input, shape index: {}, may-alias: {0,9}]   ;;  %s1717_s1 = inlined_call_operand.vmem [shape: bf16[32,128], index: 1, kind: input, shape index: {}]   ;;  %s1718_s2 = inlined_call_operand.vmem [shape: f32[1,128], index: 2, kind: input, shape index: {}]   ;;  %s1719_s3 = inlined_call_operand.vmem [shape: bf16[32,128], index: 3, kind: input, shape index: {}]   ;;  %s1720_s4 = inlined_call_operand.vmem [shape: f32[1,128], index: 4, kind: input, shape index: {}]   ;;  %s1721_s5 = inlined_call_operand.vmem [shape: bf16[32,32], index: 5, kind: input, shape index: {}]   ;;  %s1722_s6 = inlined_call_operand.vmem [shape: f32[1,32], index: 6, kind: input, shape index: {}]   ;;  %s1723_s7 = inlined_call_operand.vmem [shape: bf16[32,32], index: 7, kind: input, shape index: {}]   ;;  %s1724_s8 = inlined_call_operand.vmem [shape: f32[1,32], index: 8, kind: input, shape index: {}]   ;;  %s1725_s9 = inlined_call_operand.vmem [shape: bf16[2,64,32], index: 9, kind: output, shape index: {}, may-alias: {0,9}]  }
   0x1   :  { %s1566_s11 = smov 0  }
   0x2 LB: > { %s31_s12 = sadd.s32 1, %s1506_s10  ;;  %p1223_p0 = scmp.ge.s32.totalorder %s1510_s11, 1  ;;  %s1510_s11 = sphi %s1566_s11, %s19_s11   ;;  %s1506_s10 = sphi %s1564_s10, %s1727_s10   ;;  %s1502_s30 = sphi %s1562_s30, %s1726_s30  }
   0x3   : > { %p33_p1 = scmp.ge.s32.totalorder %s31_s12, 2  ;;  %p301_p2 = scmp.lt.s32.totalorder %s1510_s11, 3 }
   0x5   : > { %s1729_s12 = smov (%p33_p1, %s31_s12), 0  ;;  %p302_p3 = pnand %p1223_p0, %p301_p2 }
   0x6   : > { %v1436_v0 = vld [vmem:[%s1719_s3] sm:$0xff] (!%p302_p3)   ;;  %p341_p4 = scmp.lt.s32.totalorder (!%p302_p3), %s1502_s30, 1  ;;  %v1437_v1 = vld [vmem:[%s1719_s3 + $0x8] sm:$0xff] (!%p302_p3)   ;;  %vm412_vm0 = vcmask (!%p302_p3), 261120   ;;  %vm801_vm1 = vcmask (!%p302_p3), 523264   ;;  %vm1127_vm2 = vcmask (!%p302_p3), 257024  }
   0x7   : > { %305 = sbr.rel (%p302_p3) target bundleno = 1099 (0x44b), region = 56  ;;  %1328 = vmatprep.subr.bf16.mxu0 (!%p302_p3), %v1436_v0  ;;  %1408 = vmatprep.subr.bf16.mxu1 (!%p302_p3), %v1436_v0  ;;  %v1442_v2 = vld [vmem:[%s1717_s1] sm:$0xff] (!%p302_p3)   ;;  %v1443_v5 = vld [vmem:[%s1717_s1 + $0x8] sm:$0xff] (!%p302_p3)  }
   0x8   : > { %1329 = vmatpush3.bf16.msra.mxu0 (!%p302_p3), %v1436_v0  ;;  %1410 = vmatpush3.bf16.msra.mxu1 (!%p302_p3), %v1436_v0  ;;  %v1448_v3 = vld [vmem:[%s1721_s5] sm:$0xff] (!%p302_p3)   ;;  %v1449_v7 = vld [vmem:[%s1721_s5 + $0x8] sm:$0xff] (!%p302_p3)  }
   0x9   : > { %1330 = vmatprep.subr.bf16.mxu0 (!%p302_p3), %v1437_v1  ;;  %1409 = vmatprep.subr.bf16.mxu1 (!%p302_p3), %v1437_v1  ;;  %v1228_v15 = vld [vmem:[%s1720_s4] ss:$0 sm:$0xff] (!%p302_p3) }
   0xa   : > { %v1246_v34 = vld [vmem:[%s1718_s2] ss:$0 sm:$0xff] (!%p302_p3) }
   0xb   : > { %v1239_v37 = vld [vmem:[%s1722_s6] ss:$0 sm:$0xff] (!%p302_p3) }
   0xc   : > { %1331 = vmatpush3.bf16.msra.mxu0 (!%p302_p3), %v1437_v1  ;;  %1411 = vmatpush3.bf16.msra.mxu1 (!%p302_p3), %v1437_v1 }
   0xd   : > { %1352 = vmatprep.subr.bf16.mxu0 (!%p302_p3), %v1442_v2  ;;  %1340 = vmatprep.subr.bf16.mxu1 (!%p302_p3), %v1448_v3 }
   0xe   : > { %s1731_s30 = smov (!%p341_p4, %s1502_s30), 1 }
   0xf   : > { %s1278_s17 = sshll.u32 %s1731_s30, 5 }
  0x10   : > { %s345_s22 = scalar_lea.vmem %s1716_s0, %s1278_s17  ;;  %s1685_s27 = scalar_lea.vmem %s1725_s9, %s1278_s17 }
  0x11   : > { %v1438_v4 = vld [vmem:[%s345_s22] sm:$0xff]   ;;  %v1439_v6 = vld [vmem:[%s345_s22 + $0x8] sm:$0xff]   ;;  %v1440_v8 = vld [vmem:[%s345_s22 + $0x10] sm:$0xff]  }
  0x12   : > { %1332 = vmatprep.mubr.msk.bf16.mxu0 %vm412_vm0, %v1438_v4  ;;  %v1441_v9 = vld [vmem:[%s345_s22 + $0x18] sm:$0xff]   ;;  %1336 = vmatprep.mubr.msk.bf16.mxu1 %vm412_vm0, %v1440_v8  ;;  %v1609_v10 = vld [vmem:[%s345_s22] sm:$0xff]   ;;  %v1612_v11 = vld [vmem:[%s345_s22 + $0x8] sm:$0xff]  }
  0x13   : > { %1333 = vmatmul.mubr.msk.bf16.vlgmr.msra.gmra.mrb[0].mxu0 %vm412_vm0, %v1439_v6  ;;  %1337 = vmatmul.mubr.msk.bf16.vlgmr.msra.gmra.mrb[0].mxu1 %vm412_vm0, %v1441_v9  ;;  %v1614_v12 = vld [vmem:[%s345_s22 + $0x10] sm:$0xff]   ;;  %v1623_v13 = vld [vmem:[%s345_s22 + $0x18] sm:$0xff]  }
  0x14   : > { %1353 = vmatpush3.bf16.msra.mxu0 %v1442_v2  ;;  %1341 = vmatpush3.bf16.msra.mxu1 %v1448_v3 }
  0x15   : > { %1354 = vmatprep.subr.bf16.mxu0 %v1443_v5  ;;  %1356 = vmatprep.mubr.msk.bf16.mxu0 %vm412_vm0, %v1609_v10 }
  0x16   : > { %1342 = vmatprep.subr.bf16.mxu1 %v1449_v7  ;;  %1344 = vmatprep.mubr.msk.bf16.mxu1 %vm412_vm0, %v1438_v4 }
  0x18   : > { %1355 = vmatpush3.bf16.msra.mxu0 %v1443_v5  ;;  %1343 = vmatpush3.bf16.msra.mxu1 %v1449_v7 }
  0x1b   : > { %1357 = vmatmul.mubr.msk.bf16.vlgmr.msra.gmra.mrb[4].mxu0 %vm412_vm0, %v1612_v11  ;;  %1345 = vmatmul.mubr.msk.bf16.vlgmr.msra.gmra.mrb[4].mxu1 %vm412_vm0, %v1439_v6 }
  0x1c   : > { %1360 = vmatprep.mubr.msk.bf16.mxu0 %vm412_vm0, %v1614_v12  ;;  %1348 = vmatprep.mubr.msk.bf16.mxu1 %vm412_vm0, %v1440_v8 }
  0x23   : > { %1361 = vmatmul.mubr.msk.bf16.gmra.mrb[8].mxu0 %vm412_vm0, %v1623_v13  ;;  %1349 = vmatmul.mubr.msk.bf16.gmra.mrb[8].mxu1 %vm412_vm0, %v1441_v9 }
  0xe6   : > { %v1334_v14 = vpop.f32.mrb[0].mxu0  ;;  %v1338_v17 = vpop.f32.mrb[0].mxu1 }
  0xe7   : > { %v459_v16 = vpop.f32.mrb[1].mxu0  ;;  %v484_v19 = vadd.f32 %v1338_v17, %v1228_v15  ;;  %v475_v20 = vpop.f32.mrb[1].mxu1  ;;  %v468_v21 = vadd.f32 %v1334_v14, %v1228_v15 }
  0xe8   : > { %v1335_v18 = vpop.f32.mrb[2].mxu0  ;;  %v476_v24 = vadd.f32 %v1228_v15, %v475_v20  ;;  %v1339_v25 = vpop.f32.mrb[2].mxu1  ;;  %v460_v26 = vadd.f32 %v1228_v15, %v459_v16 }
  0xe9   : > { %v471_v22 = vadd.f32 %v1335_v18, %v1228_v15  ;;  %v462_v23 = vpop.f32.mrb[3].mxu0  ;;  %v487_v28 = vadd.f32 %v1339_v25, %v1228_v15  ;;  %v478_v29 = vpop.f32.mrb[3].mxu1 }
  0xea   : > { %v463_v27 = vadd.f32 %v1228_v15, %v462_v23  ;;  %v479_v31 = vadd.f32 %v1228_v15, %v478_v29 }
  0xeb   : > { %v579_v30 = vpack.c.bf16 %v471_v22, %v468_v21  ;;  %v581_v33 = vpack.c.bf16 %v487_v28, %v484_v19 }
  0xec   : > { %v578_v32 = vpack.c.bf16 %v463_v27, %v460_v26  ;;  %v580_v35 = vpack.c.bf16 %v479_v31, %v476_v24 }
  0xee   : > { %1364 = vmatprep.subr.bf16.mxu1 %v578_v32  ;;  %v1358_v36 = vpop.f32.mrb[4].mxu0  ;;  %v1346_v40 = vpop.f32.mrb[4].mxu1 }
  0xef   : > { %1365 = vmatpush3.bf16.xpose.msra.mxu1 %v578_v32  ;;  %v706_v38 = vadd.f32 %v1358_v36, %v1246_v34  ;;  %v697_v39 = vpop.f32.mrb[5].mxu0  ;;  %v556_v43 = vadd.f32 %v1346_v40, %v1239_v37  ;;  %v547_v44 = vpop.f32.mrb[5].mxu1 }
  0xf0   : > { %1366 = vmatprep.subr.bf16.mxu1 %v579_v30  ;;  %v698_v41 = vadd.f32 %v1246_v34, %v697_v39  ;;  %v1359_v42 = vpop.f32.mrb[6].mxu0  ;;  %v548_v47 = vadd.f32 %v1239_v37, %v547_v44  ;;  %v1347_v48 = vpop.f32.mrb[6].mxu1 }
  0xf1   : > { %v709_v45 = vadd.f32 %v1359_v42, %v1246_v34  ;;  %v700_v46 = vpop.f32.mrb[7].mxu0  ;;  %v559_v50 = vadd.f32 %v1347_v48, %v1239_v37  ;;  %v550_v51 = vpop.f32.mrb[7].mxu1 }
  0xf2   : > { %v701_v49 = vadd.f32 %v1246_v34, %v700_v46  ;;  %v551_v53 = vadd.f32 %v1239_v37, %v550_v51 }
  0xf3   : > { %v729_v52 = vpack.c.bf16 %v709_v45, %v706_v38  ;;  %v587_v55 = vpack.c.bf16 %v559_v50, %v556_v43 }
  0xf4   : > { %v728_v54 = vpack.c.bf16 %v701_v49, %v698_v41  ;;  %v586_v56 = vpack.c.bf16 %v551_v53, %v548_v47 }
  0xf5   : > { %591 = vst.msk [vmem:[#allocation3 + $0x8] sm:$0xff] %vm412_vm0, %v587_v55 }
  0xf6   : > { %v1362_v57 = vpop.f32.mrb[8].mxu0  ;;  %1372 = vmatprep.mubr.bf16.mxu1 %v728_v54  ;;  %590 = vst.msk [vmem:[#allocation3] sm:$0xff] %vm412_vm0, %v586_v56  ;;  %v1350_v60 = vpop.f32.mrb[8].mxu1 }
  0xf7   : > { %1367 = vmatpush3.bf16.xpose.msra.mxu1 %v579_v30  ;;  %v722_v58 = vadd.f32 %v1362_v57, %v1246_v34  ;;  %v713_v59 = vpop.f32.mrb[9].mxu0  ;;  %v572_v63 = vadd.f32 %v1350_v60, %v1239_v37  ;;  %v563_v0 = vpop.f32.mrb[9].mxu1 }
  0xf8   : > { %1368 = vmatprep.subr.bf16.mxu1 %v580_v35  ;;  %v714_v61 = vadd.f32 %v1246_v34, %v713_v59  ;;  %v1363_v62 = vpop.f32.mrb[10].mxu0  ;;  %v564_v3 = vadd.f32 %v1239_v37, %v563_v0  ;;  %v1351_v4 = vpop.f32.mrb[10].mxu1 }
  0xf9   : > { %v725_v1 = vadd.f32 %v1363_v62, %v1246_v34  ;;  %v716_v2 = vpop.f32.mrb[11].mxu0  ;;  %v575_v6 = vadd.f32 %v1351_v4, %v1239_v37  ;;  %v566_v7 = vpop.f32.mrb[11].mxu1 }
  0xfa   : > { %v717_v5 = vadd.f32 %v1246_v34, %v716_v2  ;;  %v567_v9 = vadd.f32 %v1239_v37, %v566_v7 }
  0xfb   : > { %v731_v8 = vpack.c.bf16 %v725_v1, %v722_v58  ;;  %v589_v15 = vpack.c.bf16 %v575_v6, %v572_v63 }
  0xfc   : > { %v730_v14 = vpack.c.bf16 %v717_v5, %v714_v61  ;;  %v588_v16 = vpack.c.bf16 %v567_v9, %v564_v3  ;;  %v879_v18 = vld [vmem:[#allocation3 + $0x8] sm:$0xff] }
  0xfd   : > { %v878_v17 = vld [vmem:[#allocation3] sm:$0xff]  ;;  %593 = vst.msk [vmem:[#allocation3 + $0x18] sm:$0xff] %vm412_vm0, %v589_v15 }
  0xfe   : > { %1380 = vmatprep.subr.bf16.mxu0 %v878_v17  ;;  %592 = vst.msk [vmem:[#allocation3 + $0x10] sm:$0xff] %vm412_vm0, %v588_v16 }
  0xff   : > { %1369 = vmatpush3.bf16.xpose.msra.mxu1 %v580_v35  ;;  %1381 = vmatpush3.bf16.msra.mxu0 %v878_v17 }
 0x100   : > { %1370 = vmatprep.subr.bf16.mxu1 %v581_v33  ;;  %1382 = vmatprep.subr.bf16.mxu0 %v879_v18 }
 0x103   : > { %1383 = vmatpush3.bf16.msra.mxu0 %v879_v18 }
 0x104   : > { %v881_v20 = vld [vmem:[#allocation3 + $0x18] sm:$0xff] }
 0x105   : > { %v880_v19 = vld [vmem:[#allocation3 + $0x10] sm:$0xff] }
 0x106   : > { %1384 = vmatprep.subr.bf16.mxu0 %v880_v19 }
 0x107   : > { %1371 = vmatpush3.bf16.xpose.msra.mxu1 %v581_v33  ;;  %1385 = vmatpush3.bf16.msra.mxu0 %v880_v19 }
 0x108   : > { %1386 = vmatprep.subr.bf16.mxu0 %v881_v20 }
 0x10b   : > { %1387 = vmatpush3.bf16.msra.mxu0 %v881_v20 }
 0x10e   : > { %1373 = vmatmul.mubr.bf16.vlgmr.msra.gmra.mrb[12].mxu1 %v729_v52 }
 0x10f   : > { %1376 = vmatprep.mubr.bf16.mxu1 %v730_v14 }
 0x116   : > { %1377 = vmatmul.mubr.bf16.gmra.mrb[16].mxu1 %v731_v8 }
 0x1e1   : > { %v1374_v21 = vpop.f32.mrb[12].mxu1 }
 0x1e2   : > { %v770_v22 = vpop.f32.mrb[13].mxu1  ;;  %v808_v23 = vsel %vm801_vm1, %v1374_v21, -inf }
 0x1e3   : > { %809 = vmax.xlane.f32.xlu1 %v808_v23  ;;  %v1375_v24 = vpop.f32.mrb[14].mxu1  ;;  %v802_v25 = vsel %vm801_vm1, %v770_v22, -inf }
 0x1e4   : > { %803 = vmax.xlane.f32.xlu0 %v802_v25  ;;  %v773_v26 = vpop.f32.mrb[15].mxu1  ;;  %v811_v27 = vsel %vm801_vm1, %v1375_v24, -inf }
 0x1e5   : > { %v805_v28 = vsel %vm801_vm1, %v773_v26, -inf }
 0x1e7   : > { %812 = vmax.xlane.f32.xlu1 %v811_v27 }
 0x1e8   : > { %806 = vmax.xlane.f32.xlu0 %v805_v28 }
 0x1e9   : > { %v1378_v29 = vpop.f32.mrb[16].mxu1 }
 0x1ea   : > { %v786_v30 = vpop.f32.mrb[17].mxu1  ;;  %v820_v35 = vsel %vm801_vm1, %v1378_v29, -inf }
 0x1eb   : > { %v1379_v31 = vpop.f32.mrb[18].mxu1  ;;  %v814_v32 = vsel %vm801_vm1, %v786_v30, -inf }
 0x1ec   : > { %815 = vmax.xlane.f32.xlu0 %v814_v32  ;;  %v789_v33 = vpop.f32.mrb[19].mxu1  ;;  %v823_v36 = vsel %vm801_vm1, %v1379_v31, -inf }
 0x1ed   : > { %v817_v34 = vsel %vm801_vm1, %v789_v33, -inf }
 0x1ee   : > { %818 = vmax.xlane.f32.xlu1 %v817_v34 }
 0x1f0   : > { %821 = vmax.xlane.f32.xlu0 %v820_v35 }
 0x1f2   : > { %824 = vmax.xlane.f32.xlu1 %v823_v36 }
 0x270   : > { %v810_v37 = vpop.xlane.xlu1 %809 }
 0x271   : > { %v828_v38 = vsub.f32 %v1374_v21, %v810_v37  ;;  %v804_v39 = vpop.xlane.xlu0 %803  ;;  %v1450_v21 = vld [vmem:[%s1723_s7] sm:$0xff]  }
 0x272   : > { %v826_v40 = vsub.f32 %v770_v22, %v804_v39  ;;  %1396 = vmatprep.subr.bf16.mxu0 %v1450_v21  ;;  %v1451_v22 = vld [vmem:[%s1723_s7 + $0x8] sm:$0xff]  }
 0x273   : > { %v838_v41 = vmul.f32 1.442695, %v828_v38 }
 0x274   : > { %v834_v42 = vmul.f32 1.442695, %v826_v40  ;;  %v813_v43 = vpop.xlane.xlu1 %812 }
 0x275   : > { %v829_v44 = vsub.f32 %v1375_v24, %v813_v43  ;;  %v807_v45 = vpop.xlane.xlu0 %806 }
 0x276   : > { %1456 = vpow2.f32 %v834_v42  ;;  %v827_v46 = vsub.f32 %v773_v26, %v807_v45 }
 0x277   : > { %v840_v47 = vmul.f32 1.442695, %v829_v44  ;;  %1458 = vpow2.f32 %v838_v41 }
 0x278   : > { %v836_v48 = vmul.f32 1.442695, %v827_v46 }
 0x279   : > { %1460 = vpow2.f32 %v840_v47  ;;  %v816_v49 = vpop.xlane.xlu0 %815 }
 0x27a   : > { %1462 = vpow2.f32 %v836_v48  ;;  %v830_v50 = vsub.f32 %v786_v30, %v816_v49 }
 0x27b   : > { %v819_v51 = vpop.xlane.xlu1 %818 }
 0x27c   : > { %v842_v52 = vmul.f32 1.442695, %v830_v50  ;;  %v831_v53 = vsub.f32 %v789_v33, %v819_v51 }
 0x27d   : > { %v822_v54 = vpop.xlane.xlu0 %821 }
 0x27e   : > { %1464 = vpow2.f32 %v842_v52  ;;  %v844_v55 = vmul.f32 1.442695, %v831_v53  ;;  %v832_v56 = vsub.f32 %v1378_v29, %v822_v54 }
 0x27f   : > { %v825_v57 = vpop.xlane.xlu1 %824 }
 0x280   : > { %v1457_v58 = vpop.eup %1456  ;;  %1466 = vpow2.f32 %v844_v55  ;;  %v846_v59 = vmul.f32 1.442695, %v832_v56  ;;  %v833_v60 = vsub.f32 %v1379_v31, %v825_v57 }
 0x281   : > { %v850_v61 = vsel %vm801_vm1, %v1457_v58, 0.0  ;;  %v1459_v62 = vpop.eup %1458 }
 0x282   : > { %1468 = vpow2.f32 %v846_v59  ;;  %v848_v63 = vmul.f32 1.442695, %v833_v60  ;;  %851 = vadd.xlane.f32.xlu0 %v850_v61  ;;  %v856_v3 = vsel %vm801_vm1, %v1459_v62, 0.0  ;;  %v1261_v59 = vld [vmem:[%s1724_s8] ss:$0 sm:$0xff]  ;;  %v1081_v60 = vunpack.c.l.bf16 %v1612_v11 }
 0x283   : > { %v1461_v0 = vpop.eup %1460 }
 0x284   : > { %v1463_v1 = vpop.eup %1462  ;;  %v875_v2 = vpack.c.bf16 %v1461_v0, %v1459_v62  ;;  %1470 = vpow2.f32 %v848_v63  ;;  %v859_v8 = vsel %vm801_vm1, %v1461_v0, 0.0  ;;  %v1079_v62 = vunpack.c.l.bf16 %v1609_v10 }
 0x285   : > { %v853_v4 = vsel %vm801_vm1, %v1463_v1, 0.0  ;;  %v874_v5 = vpack.c.bf16 %v1463_v1, %v1457_v58  ;;  %v1082_v1 = vunpack.c.h.bf16 %v1612_v11 }
 0x286   : > { %857 = vadd.xlane.f32.xlu0 %v856_v3  ;;  %854 = vadd.xlane.f32.xlu1 %v853_v4  ;;  %v1080_v4 = vunpack.c.h.bf16 %v1609_v10 }
 0x287   : > { %1388 = vmatprep.mubr.msk.bf16.mxu0 %vm801_vm1, %v874_v5 }
 0x288   : > { %v1465_v6 = vpop.eup %1464  ;;  %1389 = vmatmul.mubr.msk.bf16.vlgmr.msra.gmra.mrb[12].mxu0 %vm801_vm1, %v875_v2 }
 0x289   : > { %v862_v7 = vsel %vm801_vm1, %v1465_v6, 0.0  ;;  %1397 = vmatpush3.bf16.msra.mxu0 %v1450_v21 }
 0x28a   : > { %v1467_v9 = vpop.eup %1466  ;;  %863 = vadd.xlane.f32.xlu0 %v862_v7  ;;  %860 = vadd.xlane.f32.xlu1 %v859_v8 }
 0x28b   : > { %v876_v14 = vpack.c.bf16 %v1467_v9, %v1465_v6  ;;  %v865_v17 = vsel %vm801_vm1, %v1467_v9, 0.0  ;;  %1398 = vmatprep.subr.bf16.mxu0 %v1451_v22 }
 0x28c   : > { %v1469_v15 = vpop.eup %1468 }
 0x28d   : > { %1392 = vmatprep.mubr.msk.bf16.mxu0 %vm801_vm1, %v876_v14  ;;  %v868_v16 = vsel %vm801_vm1, %v1469_v15, 0.0  ;;  %1399 = vmatpush3.bf16.msra.mxu0 %v1451_v22 }
 0x28e   : > { %v1471_v18 = vpop.eup %1470  ;;  %869 = vadd.xlane.f32.xlu0 %v868_v16  ;;  %866 = vadd.xlane.f32.xlu1 %v865_v17 }
 0x28f   : > { %v877_v19 = vpack.c.bf16 %v1471_v18, %v1469_v15  ;;  %v871_v20 = vsel %vm801_vm1, %v1471_v18, 0.0  ;;  %v1085_v18 = vunpack.c.l.bf16 %v1623_v13 }
 0x291   : > { %1393 = vmatmul.mubr.msk.bf16.gmra.mrb[16].mxu0 %vm801_vm1, %v877_v19 }
 0x292   : > { %872 = vadd.xlane.f32.xlu1 %v871_v20  ;;  %v1083_v20 = vunpack.c.l.bf16 %v1614_v12 }
 0x30f   : > { %v852_v23 = vpop.xlane.xlu0 %851 }
 0x310   : > { %1472 = vrcp.f32 %v852_v23  ;;  %v1086_v23 = vunpack.c.h.bf16 %v1623_v13 }
 0x313   : > { %v855_v24 = vpop.xlane.xlu1 %854  ;;  %v858_v25 = vpop.xlane.xlu0 %857 }
 0x314   : > { %1474 = vrcp.f32 %v858_v25 }
 0x317   : > { %v861_v26 = vpop.xlane.xlu1 %860  ;;  %v864_v27 = vpop.xlane.xlu0 %863 }
 0x318   : > { %1476 = vrcp.f32 %v861_v26  ;;  %v1084_v26 = vunpack.c.h.bf16 %v1614_v12 }
 0x319   : > { %1478 = vrcp.f32 %v855_v24 }
 0x31a   : > { %1480 = vrcp.f32 %v864_v27  ;;  %v1473_v31 = vpop.eup %1472 }
 0x31b   : > { %v867_v28 = vpop.xlane.xlu1 %866  ;;  %v870_v29 = vpop.xlane.xlu0 %869 }
 0x31c   : > { %1482 = vrcp.f32 %v870_v29 }
 0x31e   : > { %v1475_v33 = vpop.eup %1474 }
 0x31f   : > { %v873_v30 = vpop.xlane.xlu1 %872 }
 0x320   : > { %1484 = vrcp.f32 %v873_v30 }
 0x321   : > { %1486 = vrcp.f32 %v867_v28 }
 0x322   : > { %v1477_v35 = vpop.eup %1476 }
 0x323   : > { %v1479_v37 = vpop.eup %1478 }
 0x324   : > { %v1481_v45 = vpop.eup %1480 }
 0x326   : > { %v1483_v47 = vpop.eup %1482 }
 0x32a   : > { %v1485_v49 = vpop.eup %1484 }
 0x32b   : > { %v1487_v51 = vpop.eup %1486 }
 0x35b   : > { %v1390_v32 = vpop.f32.mrb[12].mxu0 }
 0x35c   : > { %v928_v34 = vpop.f32.mrb[13].mxu0  ;;  %v969_v38 = vmul.f32 %v1475_v33, %v1390_v32 }
 0x35d   : > { %v1391_v36 = vpop.f32.mrb[14].mxu0  ;;  %v967_v41 = vmul.f32 %v1473_v31, %v928_v34 }
 0x35e   : > { %v970_v39 = vmul.f32 %v1477_v35, %v1391_v36  ;;  %v931_v40 = vpop.f32.mrb[15].mxu0 }
 0x35f   : > { %v968_v42 = vmul.f32 %v1479_v37, %v931_v40 }
 0x360   : > { %v976_v43 = vpack.c.bf16 %v970_v39, %v969_v38 }
 0x361   : > { %v975_v44 = vpack.c.bf16 %v968_v42, %v967_v41 }
 0x363   : > { %1400 = vmatprep.mubr.msk.bf16.mxu0 %vm412_vm0, %v975_v44 }
 0x364   : > { %v1394_v46 = vpop.f32.mrb[16].mxu0  ;;  %1401 = vmatmul.mubr.msk.bf16.vlgmr.msra.gmra.mrb[20].mxu0 %vm412_vm0, %v976_v43 }
 0x365   : > { %v944_v48 = vpop.f32.mrb[17].mxu0  ;;  %v973_v52 = vmul.f32 %v1483_v47, %v1394_v46 }
 0x366   : > { %v1395_v50 = vpop.f32.mrb[18].mxu0  ;;  %v971_v55 = vmul.f32 %v1481_v45, %v944_v48 }
 0x367   : > { %v974_v53 = vmul.f32 %v1485_v49, %v1395_v50  ;;  %v947_v54 = vpop.f32.mrb[19].mxu0 }
 0x368   : > { %v972_v56 = vmul.f32 %v1487_v51, %v947_v54 }
 0x369   : > { %v978_v57 = vpack.c.bf16 %v974_v53, %v973_v52 }
 0x36a   : > { %v977_v58 = vpack.c.bf16 %v972_v56, %v971_v55 }
 0x36c   : > { %1404 = vmatprep.mubr.msk.bf16.mxu0 %vm412_vm0, %v977_v58 }
 0x36d   : > { %1405 = vmatmul.mubr.msk.bf16.gmra.mrb[24].mxu0 %vm412_vm0, %v978_v57 }
 0x437   : > { %v1402_v61 = vpop.f32.mrb[20].mxu0 }
 0x438   : > { %v1057_v63 = vadd.f32 %v1402_v61, %v1261_v59  ;;  %v1048_v0 = vpop.f32.mrb[21].mxu0 }
 0x439   : > { %v1049_v2 = vadd.f32 %v1261_v59, %v1048_v0  ;;  %v1403_v3 = vpop.f32.mrb[22].mxu0 }
 0x43a   : > { %v1089_v5 = vadd.f32 %v1081_v60, %v1057_v63  ;;  %v1060_v6 = vadd.f32 %v1403_v3, %v1261_v59  ;;  %v1051_v7 = vpop.f32.mrb[23].mxu0 }
 0x43b   : > { %v1087_v8 = vadd.f32 %v1079_v62, %v1049_v2  ;;  %v1052_v11 = vadd.f32 %v1261_v59, %v1051_v7 }
 0x43c   : > { %v1282_v9 = vpack.c.bf16 %v1089_v5, %v1089_v5  ;;  %v1090_v14 = vadd.f32 %v1082_v1, %v1060_v6 }
 0x43d   : > { %v1280_v15 = vpack.c.bf16 %v1087_v8, %v1087_v8  ;;  %v1088_v10 = vadd.f32 %v1080_v4, %v1052_v11 }
 0x43e   : > { %1130 = vst.msk [vmem:[%s1685_s27 + $0x8] sm:$0xf] %vm1127_vm2, %v1282_v9  ;;  %v1283_v16 = vpack.c.bf16 %v1090_v14, %v1090_v14 }
 0x43f   : > { %1128 = vst.msk [vmem:[%s1685_s27] sm:$0xf] %vm1127_vm2, %v1280_v15  ;;  %v1281_v17 = vpack.c.bf16 %v1088_v10, %v1088_v10 }
 0x440   : > { %1131 = vst.msk [vmem:[%s1685_s27 + $0xc] sm:$0xf] %vm1127_vm2, %v1283_v16  ;;  %v1406_v19 = vpop.f32.mrb[24].mxu0 }
 0x441   : > { %1129 = vst.msk [vmem:[%s1685_s27 + $0x4] sm:$0xf] %vm1127_vm2, %v1281_v17  ;;  %v1073_v21 = vadd.f32 %v1406_v19, %v1261_v59  ;;  %v1064_v22 = vpop.f32.mrb[25].mxu0 }
 0x442   : > { %v1065_v24 = vadd.f32 %v1261_v59, %v1064_v22  ;;  %v1407_v25 = vpop.f32.mrb[26].mxu0 }
 0x443   : > { %v1093_v27 = vadd.f32 %v1085_v18, %v1073_v21  ;;  %v1076_v28 = vadd.f32 %v1407_v25, %v1261_v59  ;;  %v1067_v29 = vpop.f32.mrb[27].mxu0 }
 0x444   : > { %v1091_v30 = vadd.f32 %v1083_v20, %v1065_v24  ;;  %v1068_v31 = vadd.f32 %v1261_v59, %v1067_v29 }
 0x445   : > { %v1286_v32 = vpack.c.bf16 %v1093_v27, %v1093_v27  ;;  %v1094_v33 = vadd.f32 %v1086_v23, %v1076_v28 }
 0x446   : > { %v1284_v34 = vpack.c.bf16 %v1091_v30, %v1091_v30  ;;  %v1092_v35 = vadd.f32 %v1084_v26, %v1068_v31 }
 0x447   : > { %1134 = vst.msk [vmem:[%s1685_s27 + $0x18] sm:$0xf] %vm1127_vm2, %v1286_v32  ;;  %v1287_v36 = vpack.c.bf16 %v1094_v33, %v1094_v33 }
 0x448   : > { %1132 = vst.msk [vmem:[%s1685_s27 + $0x10] sm:$0xf] %vm1127_vm2, %v1284_v34  ;;  %v1285_v13 = vpack.c.bf16 %v1092_v35, %v1092_v35 }
 0x449   : > { %1135 = vst.msk [vmem:[%s1685_s27 + $0x1c] sm:$0xf] %vm1127_vm2, %v1287_v36 }
 0x44a   : > { %1133 = vst.msk [vmem:[%s1685_s27 + $0x14] sm:$0xf] %vm1127_vm2, %v1285_v13 }
 0x44b PF: > { %s19_s11 = sadd.s32 1, %s1510_s11   ;;  %s1726_s30 = smov %s1506_s10 }
 0x44c   : > { %p16_p5 = scmp.ge.s32.totalorder %s19_s11, 4   ;;  %s1727_s10 = smov %s1729_s12 }
 0x44e   :  { %18 = sbr.rel (!%p16_p5) target bundleno = 2 (0x2), region = 91 }

</bundles_post_ra>
